<compile_context>
chip_gen: v5e
topology: v5e:2x2
jax: 0.10.0
libtpu: 0.0.40
codegen_flags: <defaults>
</compile_context>

<pallas_src>
import jax
import jax.numpy as jnp
from jax.experimental import pallas as pl
from jax.experimental.pallas import tpu as pltpu


def _round_up(x, m):
    return ((x + m - 1) // m) * m


def _cdiv(a, b):
    return (a + b - 1) // b


def mlp_critic_kernel(obs_ref, w1_ref, b1_ref, w2_ref, b2_ref, w3_ref, b3_ref,
                      out_ref):
    # Packed layout: each row of obs_ref holds PACK original observations in
    # its lanes; block-diagonal weights keep them independent.
    h1 = jnp.tanh(
        jnp.dot(obs_ref[...], w1_ref[...], preferred_element_type=jnp.float32)
        + b1_ref[...])
    h2 = jnp.tanh(
        jnp.dot(h1, w2_ref[...], preferred_element_type=jnp.float32)
        + b2_ref[...])
    # Value head on the MXU: (tm_p, P*H2) @ (P*H2, P) -> (tm_p, P); entry
    # (i, j) is the value of original batch row i*P + j.
    v = (jnp.dot(h2, w3_ref[...], preferred_element_type=jnp.float32)
         + b3_ref[0])
    out_ref[...] = v.astype(out_ref.dtype)


def _block_diag(w, p):
    """p copies of w on the diagonal: (p*d_in, p*d_out)."""
    return jnp.kron(jnp.eye(p, dtype=w.dtype), w)


def mlp_critic_forward(obs, params, *, block_rows=8192, pack=8,
                       compute_dtype=jnp.float32):
    """obs: (B, obs_dim) f32.  params: dict w1,b1,w2,b2,w3,b3 with weights
    stored (in_features, out_features).  Returns (B,) f32."""
    assert pack >= 1
    B, obs_dim = obs.shape

    # --- batch-in-lanes repack of the parameters (once per call, cheap) ----
    w1_bd = _block_diag(params["w1"], pack).astype(compute_dtype)   # (P*D,  P*H1)
    w2_bd = _block_diag(params["w2"], pack).astype(compute_dtype)   # (P*H1, P*H2)
    w3_bd = _block_diag(params["w3"], pack).astype(compute_dtype)   # (P*H2, P)
    b1_bd = jnp.tile(params["b1"].reshape(1, -1), (1, pack)).astype(compute_dtype)
    b2_bd = jnp.tile(params["b2"].reshape(1, -1), (1, pack)).astype(compute_dtype)
    b3_s = params["b3"].reshape(-1).astype(jnp.float32)             # (1,) SMEM scalar

    # --- tile selection -----------------------------------------------------
    # Each packed row carries `pack` observations in its lanes.
    bp = _cdiv(B, pack)                       # packed rows needed
    tm_cap = max(block_rows // pack, 8)       # max packed rows per grid step
    n_steps = _cdiv(bp, tm_cap)
    # Keep >= 2 grid steps for large batches so ("parallel",) can shard work
    # across v7x's two TensorCores (no-op on v5e/v6e).
    if n_steps == 1 and bp >= 256:
        n_steps = 2
    tm_p = _round_up(_cdiv(bp, n_steps), 8)   # sublane-aligned packed tile
    bp_pad = _round_up(bp, tm_p)
    b_pad = bp_pad * pack

    obs_p = obs.astype(compute_dtype)
    if b_pad != B:
        obs_p = jnp.pad(obs_p, ((0, b_pad - B), (0, 0)))
    obs_packed = obs_p.reshape(bp_pad, pack * obs_dim)  # contiguous, free

    grid = (bp_pad // tm_p,)

    def resident(a):
        # Full-array block with constant index_map -> the pipeliner keeps it
        # resident in VMEM across every grid step (no re-DMA).
        return pl.BlockSpec(a.shape, lambda i, _nd=a.ndim: (0,) * _nd,
                            memory_space=pltpu.VMEM)

    out = pl.pallas_call(
        mlp_critic_kernel,
        out_shape=jax.ShapeDtypeStruct((bp_pad, pack), jnp.float32),
        grid=grid,
        in_specs=[
            pl.BlockSpec((tm_p, pack * obs_dim), lambda i: (i, 0),
                         memory_space=pltpu.VMEM),
            resident(w1_bd), resident(b1_bd),
            resident(w2_bd), resident(b2_bd),
            resident(w3_bd),
            pl.BlockSpec(memory_space=pltpu.MemorySpace.SMEM),   # b3 scalar
        ],
        out_specs=pl.BlockSpec((tm_p, pack), lambda i: (i, 0),
                               memory_space=pltpu.VMEM),
        compiler_params=pltpu.CompilerParams(
            dimension_semantics=("parallel",),          # 2 TCs on v7x
            vmem_limit_bytes=32 * 1024 * 1024),         # safe on v7x 64 MiB
    )(obs_packed, w1_bd, b1_bd, w2_bd, b2_bd, w3_bd, b3_s)

    # (bp_pad, pack) -> (b_pad,) preserves original row order; drop padding.
    return out.reshape(b_pad)[:B]


def init_params(key, obs_dim, hidden_sizes):
    """Deterministic init matching nn.Linear's U(-1/sqrt(fan_in), +1/sqrt(fan_in)).

    Weights stored as (in_features, out_features) (transpose of PyTorch) so
    the kernel does plain row-major matmuls; biases as (1, out) rows.
    """
    sizes = [obs_dim] + list(hidden_sizes) + [1]
    names = ["1", "2", "3"]
    assert len(sizes) - 1 == len(names)
    params = {}
    for n, (d_in, d_out) in zip(names, zip(sizes[:-1], sizes[1:])):
        key, kw, kb = jax.random.split(key, 3)
        bound = 1.0 / jnp.sqrt(float(d_in))
        params[f"w{n}"] = jax.random.uniform(
            kw, (d_in, d_out), jnp.float32, -bound, bound)
        params[f"b{n}"] = jax.random.uniform(
            kb, (1, d_out), jnp.float32, -bound, bound)
    return params


def _reference(o, p):
    h1 = jnp.tanh(o @ p["w1"] + p["b1"])
    h2 = jnp.tanh(h1 @ p["w2"] + p["b2"])
    return jnp.squeeze(h2 @ p["w3"] + p["b3"], -1)


if __name__ == "__main__":
    key = jax.random.PRNGKey(0)
    batch, obs_dim, hidden_sizes = 8, 16, [32, 32]

    k_obs, k_params = jax.random.split(key)
    obs = jax.random.normal(k_obs, (batch, obs_dim), jnp.float32)
    params = init_params(k_params, obs_dim, hidden_sizes)

    # Small single-tile case (B=8 packs into one lane-dense row).
    v = mlp_critic_forward(obs, params)
    jax.block_until_ready(v)
    v_ref = _reference(obs, params)
    assert v.shape == (batch,)
    assert jnp.allclose(v, v_ref, atol=1e-5, rtol=1e-5)

    # Multi-tile + ragged-batch path (grid > 1, padded tail sliced off).
    k_obs2, _ = jax.random.split(k_obs)
    obs2 = jax.random.normal(k_obs2, (300, obs_dim), jnp.float32)
    v2 = mlp_critic_forward(obs2, params, block_rows=128)
    jax.block_until_ready(v2)
    v2_ref = _reference(obs2, params)
    assert v2.shape == (300,)
    assert jnp.allclose(v2, v2_ref, atol=1e-5, rtol=1e-5)

    print("KERNEL_OK")
</pallas_src>

<mosaic_0001>
module attributes {stable_mosaic.version = 11 : i64} {
  func.func @mlp_critic_kernel(%arg0: i32, %arg1: memref<8x128xf32, #tpu.memory_space<vmem>>, %arg2: memref<128x256xf32, #tpu.memory_space<vmem>>, %arg3: memref<1x256xf32, #tpu.memory_space<vmem>>, %arg4: memref<256x256xf32, #tpu.memory_space<vmem>>, %arg5: memref<1x256xf32, #tpu.memory_space<vmem>>, %arg6: memref<256x8xf32, #tpu.memory_space<vmem>>, %arg7: memref<1xf32, #tpu.memory_space<smem>>, %arg8: memref<8x8xf32, #tpu.memory_space<vmem>>) attributes {dimension_semantics = [#tpu.dimension_semantics<parallel>], iteration_bounds = array<i64: 1>, scalar_prefetch = 0 : i64, scratch_operands = 0 : i64, tpu.core_type = #tpu.core_type<tc>, window_params = [{transform_indices = @transform_0, window_bounds = array<i64: 8, 128>}, {pipeline_mode = #tpu.pipeline_mode<synchronous>, transform_indices = @transform_1, window_bounds = array<i64: 128, 256>}, {pipeline_mode = #tpu.pipeline_mode<synchronous>, transform_indices = @transform_2, window_bounds = array<i64: 1, 256>}, {pipeline_mode = #tpu.pipeline_mode<synchronous>, transform_indices = @transform_3, window_bounds = array<i64: 256, 256>}, {pipeline_mode = #tpu.pipeline_mode<synchronous>, transform_indices = @transform_4, window_bounds = array<i64: 1, 256>}, {pipeline_mode = #tpu.pipeline_mode<synchronous>, transform_indices = @transform_5, window_bounds = array<i64: 256, 8>}, {transform_indices = @transform_6, window_bounds = array<i64: 1>}, {transform_indices = @transform_7, window_bounds = array<i64: 8, 8>}]} {
    %c0 = arith.constant 0 : index
    %c0_0 = arith.constant 0 : index
    %0 = vector.load %arg1[%c0, %c0_0] : memref<8x128xf32, #tpu.memory_space<vmem>>, vector<8x128xf32>
    %c0_1 = arith.constant 0 : index
    %c0_2 = arith.constant 0 : index
    %1 = vector.load %arg2[%c0_1, %c0_2] : memref<128x256xf32, #tpu.memory_space<vmem>>, vector<128x256xf32>
    %cst = arith.constant dense<0.000000e+00> : vector<8x256xf32>
    %2 = tpu.matmul %0, %1, %cst {dimension_numbers = #tpu.dot_dimension_numbers<[1], [0], [0], [1], [0, 0, 1, 1], [], []>} : vector<8x128xf32>, vector<128x256xf32>, vector<8x256xf32> -> vector<8x256xf32>
    %c0_3 = arith.constant 0 : index
    %c0_4 = arith.constant 0 : index
    %3 = vector.load %arg3[%c0_3, %c0_4] : memref<1x256xf32, #tpu.memory_space<vmem>>, vector<1x256xf32>
    %4 = vector.broadcast %3 : vector<1x256xf32> to vector<8x256xf32>
    %5 = arith.addf %2, %4 : vector<8x256xf32>
    %6 = math.tanh %5 : vector<8x256xf32>
    %c0_5 = arith.constant 0 : index
    %c0_6 = arith.constant 0 : index
    %7 = vector.load %arg4[%c0_5, %c0_6] : memref<256x256xf32, #tpu.memory_space<vmem>>, vector<256x256xf32>
    %cst_7 = arith.constant dense<0.000000e+00> : vector<8x256xf32>
    %8 = tpu.matmul %6, %7, %cst_7 {dimension_numbers = #tpu.dot_dimension_numbers<[1], [0], [0], [1], [0, 0, 1, 1], [], []>} : vector<8x256xf32>, vector<256x256xf32>, vector<8x256xf32> -> vector<8x256xf32>
    %c0_8 = arith.constant 0 : index
    %c0_9 = arith.constant 0 : index
    %9 = vector.load %arg5[%c0_8, %c0_9] : memref<1x256xf32, #tpu.memory_space<vmem>>, vector<1x256xf32>
    %10 = vector.broadcast %9 : vector<1x256xf32> to vector<8x256xf32>
    %11 = arith.addf %8, %10 : vector<8x256xf32>
    %12 = math.tanh %11 : vector<8x256xf32>
    %c0_10 = arith.constant 0 : index
    %c0_11 = arith.constant 0 : index
    %13 = vector.load %arg6[%c0_10, %c0_11] : memref<256x8xf32, #tpu.memory_space<vmem>>, vector<256x8xf32>
    %cst_12 = arith.constant dense<0.000000e+00> : vector<8x8xf32>
    %14 = tpu.matmul %12, %13, %cst_12 {dimension_numbers = #tpu.dot_dimension_numbers<[1], [0], [0], [1], [0, 0, 1, 1], [], []>} : vector<8x256xf32>, vector<256x8xf32>, vector<8x8xf32> -> vector<8x8xf32>
    %c0_13 = arith.constant 0 : index
    %15 = memref.load %arg7[%c0_13] : memref<1xf32, #tpu.memory_space<smem>>
    %16 = vector.broadcast %15 : f32 to vector<8x8xf32>
    %17 = arith.addf %14, %16 : vector<8x8xf32>
    %c0_14 = arith.constant 0 : index
    %c0_15 = arith.constant 0 : index
    %18 = vector.load %arg8[%c0_14, %c0_15] : memref<8x8xf32, #tpu.memory_space<vmem>>, vector<8x8xf32>
    tpu.vector_store %arg8[%c0_14, %c0_15], %17 {strides = array<i32>} : memref<8x8xf32, #tpu.memory_space<vmem>>, vector<8x8xf32>,
    return
  }
  func.func @transform_0(%arg0: i32) -> (i32, i32) {
    %c0_i32 = arith.constant 0 : i32
    %c0_i32_0 = arith.constant 0 : i32
    return %arg0, %c0_i32 : i32, i32
  }
  func.func @transform_1(%arg0: i32) -> (i32, i32) {
    %c0_i32 = arith.constant 0 : i32
    %c0_i32_0 = arith.constant 0 : i32
    %c0_i32_1 = arith.constant 0 : i32
    return %c0_i32, %c0_i32_0 : i32, i32
  }
  func.func @transform_2(%arg0: i32) -> (i32, i32) {
    %c0_i32 = arith.constant 0 : i32
    %c0_i32_0 = arith.constant 0 : i32
    %c0_i32_1 = arith.constant 0 : i32
    return %c0_i32, %c0_i32_0 : i32, i32
  }
  func.func @transform_3(%arg0: i32) -> (i32, i32) {
    %c0_i32 = arith.constant 0 : i32
    %c0_i32_0 = arith.constant 0 : i32
    %c0_i32_1 = arith.constant 0 : i32
    return %c0_i32, %c0_i32_0 : i32, i32
  }
  func.func @transform_4(%arg0: i32) -> (i32, i32) {
    %c0_i32 = arith.constant 0 : i32
    %c0_i32_0 = arith.constant 0 : i32
    %c0_i32_1 = arith.constant 0 : i32
    return %c0_i32, %c0_i32_0 : i32, i32
  }
  func.func @transform_5(%arg0: i32) -> (i32, i32) {
    %c0_i32 = arith.constant 0 : i32
    %c0_i32_0 = arith.constant 0 : i32
    %c0_i32_1 = arith.constant 0 : i32
    return %c0_i32, %c0_i32_0 : i32, i32
  }
  func.func @transform_6(%arg0: i32) -> i32 {
    %c0_i32 = arith.constant 0 : i32
    %c0_i32_0 = arith.constant 0 : i32
    return %c0_i32 : i32
  }
  func.func @transform_7(%arg0: i32) -> (i32, i32) {
    %c0_i32 = arith.constant 0 : i32
    %c0_i32_0 = arith.constant 0 : i32
    return %arg0, %c0_i32 : i32, i32
  }
}

</mosaic_0001>

<bundles_post_ra>
// kernel: tpu_custom_call.1
= control target key start
LH: loop header
LB: loop body
LE: loop exit
PB: predicated region body
PF: predicated region fallthrough
CT: control target
= control target key end

     0   :  { %13 = vsyncpa [#allocation4], 0  ;;  %s688_s0 = inlined_call_operand.vmem [shape: f32[8,128], index: 0, kind: input, shape index: {}]   ;;  %s689_s1 = inlined_call_operand.vmem [shape: f32[128,256], index: 1, kind: input, shape index: {}]   ;;  %s690_s2 = inlined_call_operand.vmem [shape: f32[1,256], index: 2, kind: input, shape index: {}]   ;;  %s691_s3 = inlined_call_operand.hbm [shape: f32[256,256], index: 3, kind: input, shape index: {}]   ;;  %s692_s4 = inlined_call_operand.vmem [shape: f32[1,256], index: 4, kind: input, shape index: {}]   ;;  %s693_s5 = inlined_call_operand.vmem [shape: f32[256,8], index: 5, kind: input, shape index: {}]   ;;  %s694_s6 = inlined_call_operand.<no memory space> [shape: f32[1], index: 6, kind: input, shape index: {}]   ;;  %s695_s7 = inlined_call_operand.hbm [shape: f32[8,8], index: 7, kind: output, shape index: {}]  }
   0x1   :  { %14 = vsyncpa [#allocation5], 0  ;;  %s25_s26 = sshll.u32 %s691_s3, 4  ;;  %s434_s27 = smov [#allocation3]   ;;  %s26_s26 = int_to_ptr.hbm [resolvable:$true] %s25_s26 }
   0x2   :  { %s27_s28 = sshll.u32 %s434_s27, 4  ;;  %s435_s29 = smov 256   ;;  %s28_s28 = int_to_ptr.vmem [resolvable:$true] %s27_s28 }
   0x3   :  { %s436_s30 = smov 16  }
   0x4   :  { %33 = dma.hbm_to_vmem [thread:$0]  %s26_s26, 8192, %s28_s28, [#allocation4], %s435_s29, %s435_s29, %s436_s30  }
   0x5   :  { %430 = dma.done.wait [#allocation4], 8192  }
   0x6   :  { %431 = vsyncadd [#allocation4], 4294959104  ;;  %v75_v0 = vld [vmem:[%s689_s1 + $0xf0] sm:$0xff]  ;;  %v73_v1 = vld [vmem:[%s689_s1 + $0xe0] sm:$0xff]  ;;  %s360_s17 = sshll.u32 %s695_s7, 4  ;;  %vm351_vm0 = vcmask 64512   ;;  %s361_s17 = int_to_ptr.hbm [resolvable:$true] %s360_s17 }
   0x7   :  { %v76_v2 = vld [vmem:[%s689_s1 + $0xf8] sm:$0xff]  ;;  %83 = vmatpush.msra.mxu0 %v75_v0  ;;  %v74_v3 = vld [vmem:[%s689_s1 + $0xe8] sm:$0xff]  ;;  %v71_v4 = vld [vmem:[%s689_s1 + $0xd0] sm:$0xff] }
   0x8   :  { %103 = vmatpush.msra.mxu1 %v76_v2  ;;  %v72_v5 = vld [vmem:[%s689_s1 + $0xd8] sm:$0xff]  ;;  %v69_v6 = vld [vmem:[%s689_s1 + $0xc0] sm:$0xff]  ;;  %v70_v7 = vld [vmem:[%s689_s1 + $0xc8] sm:$0xff] }
   0x9   :  { %84 = vmatpush.msra.mxu0 %v73_v1  ;;  %v67_v8 = vld [vmem:[%s689_s1 + $0xb0] sm:$0xff]  ;;  %v68_v9 = vld [vmem:[%s689_s1 + $0xb8] sm:$0xff]  ;;  %v65_v10 = vld [vmem:[%s689_s1 + $0xa0] sm:$0xff] }
   0xa   :  { %104 = vmatpush.msra.mxu1 %v74_v3  ;;  %v66_v11 = vld [vmem:[%s689_s1 + $0xa8] sm:$0xff]  ;;  %v63_v12 = vld [vmem:[%s689_s1 + $0x90] sm:$0xff]  ;;  %v64_v13 = vld [vmem:[%s689_s1 + $0x98] sm:$0xff] }
   0xb   :  { %85 = vmatpush.msra.mxu0 %v71_v4  ;;  %v155_v14 = vld [vmem:[#allocation3 + $0xf0] sm:$0xff]  ;;  %v153_v15 = vld [vmem:[#allocation3 + $0xe0] sm:$0xff]  ;;  %v62_v17 = vld [vmem:[%s689_s1 + $0x88] sm:$0xff] }
   0xc   :  { %105 = vmatpush.msra.mxu1 %v72_v5  ;;  %v61_v16 = vld [vmem:[%s689_s1 + $0x80] sm:$0xff]  ;;  %195 = vmatpush.msra.mxu2 %v155_v14  ;;  %v187_v18 = vld [vmem:[#allocation3 + $0x1f0] sm:$0xff]  ;;  %v60_v22 = vld [vmem:[%s689_s1 + $0x78] sm:$0xff] }
   0xd   :  { %86 = vmatpush.msra.mxu0 %v69_v6  ;;  %v151_v19 = vld [vmem:[#allocation3 + $0xd0] sm:$0xff]  ;;  %v185_v20 = vld [vmem:[#allocation3 + $0x1e0] sm:$0xff]  ;;  %215 = vmatpush.msra.mxu3 %v187_v18  ;;  %v58_v26 = vld [vmem:[%s689_s1 + $0x68] sm:$0xff] }
   0xe   :  { %106 = vmatpush.msra.mxu1 %v70_v7  ;;  %v59_v21 = vld [vmem:[%s689_s1 + $0x70] sm:$0xff]  ;;  %196 = vmatpush.msra.mxu2 %v153_v15  ;;  %v149_v23 = vld [vmem:[#allocation3 + $0xc0] sm:$0xff]  ;;  %v56_v30 = vld [vmem:[%s689_s1 + $0x58] sm:$0xff] }
   0xf   :  { %87 = vmatpush.msra.mxu0 %v67_v8  ;;  %v183_v24 = vld [vmem:[#allocation3 + $0x1d0] sm:$0xff]  ;;  %v57_v25 = vld [vmem:[%s689_s1 + $0x60] sm:$0xff]  ;;  %216 = vmatpush.msra.mxu3 %v185_v20  ;;  %v54_v34 = vld [vmem:[%s689_s1 + $0x48] sm:$0xff] }
  0x10   :  { %107 = vmatpush.msra.mxu1 %v68_v9  ;;  %197 = vmatpush.msra.mxu2 %v151_v19  ;;  %v147_v27 = vld [vmem:[#allocation3 + $0xb0] sm:$0xff]  ;;  %v181_v28 = vld [vmem:[#allocation3 + $0x1c0] sm:$0xff]  ;;  %v52_v38 = vld [vmem:[%s689_s1 + $0x38] sm:$0xff] }
  0x11   :  { %88 = vmatpush.msra.mxu0 %v65_v10  ;;  %v55_v29 = vld [vmem:[%s689_s1 + $0x50] sm:$0xff]  ;;  %217 = vmatpush.msra.mxu3 %v183_v24  ;;  %v145_v31 = vld [vmem:[#allocation3 + $0xa0] sm:$0xff]  ;;  %v50_v42 = vld [vmem:[%s689_s1 + $0x28] sm:$0xff] }
  0x12   :  { %108 = vmatpush.msra.mxu1 %v66_v11  ;;  %198 = vmatpush.msra.mxu2 %v149_v23  ;;  %v179_v32 = vld [vmem:[#allocation3 + $0x1b0] sm:$0xff]  ;;  %v53_v33 = vld [vmem:[%s689_s1 + $0x40] sm:$0xff]  ;;  %v48_v46 = vld [vmem:[%s689_s1 + $0x18] sm:$0xff] }
  0x13   :  { %89 = vmatpush.msra.mxu0 %v63_v12  ;;  %218 = vmatpush.msra.mxu3 %v181_v28  ;;  %v143_v35 = vld [vmem:[#allocation3 + $0x90] sm:$0xff]  ;;  %v177_v36 = vld [vmem:[#allocation3 + $0x1a0] sm:$0xff]  ;;  %v46_v50 = vld [vmem:[%s689_s1 + $0x8] sm:$0xff] }
  0x14   :  { %109 = vmatpush.msra.mxu1 %v64_v13  ;;  %199 = vmatpush.msra.mxu2 %v147_v27  ;;  %v51_v37 = vld [vmem:[%s689_s1 + $0x30] sm:$0xff]  ;;  %v141_v39 = vld [vmem:[#allocation3 + $0x80] sm:$0xff]  ;;  %v156_v52 = vld [vmem:[#allocation3 + $0xf8] sm:$0xff] }
  0x15   :  { %90 = vmatpush.msra.mxu0 %v61_v16  ;;  %219 = vmatpush.msra.mxu3 %v179_v32  ;;  %v175_v40 = vld [vmem:[#allocation3 + $0x190] sm:$0xff]  ;;  %v49_v41 = vld [vmem:[%s689_s1 + $0x20] sm:$0xff]  ;;  %v188_v53 = vld [vmem:[#allocation3 + $0x1f8] sm:$0xff] }
  0x16   :  { %110 = vmatpush.msra.mxu1 %v62_v17  ;;  %200 = vmatpush.msra.mxu2 %v145_v31  ;;  %v139_v43 = vld [vmem:[#allocation3 + $0x70] sm:$0xff]  ;;  %v173_v44 = vld [vmem:[#allocation3 + $0x180] sm:$0xff]  ;;  %v154_v56 = vld [vmem:[#allocation3 + $0xe8] sm:$0xff] }
  0x17   :  { %91 = vmatpush.msra.mxu0 %v59_v21  ;;  %220 = vmatpush.msra.mxu3 %v177_v36  ;;  %v47_v45 = vld [vmem:[%s689_s1 + $0x10] sm:$0xff]  ;;  %v137_v47 = vld [vmem:[#allocation3 + $0x60] sm:$0xff]  ;;  %v186_v57 = vld [vmem:[#allocation3 + $0x1e8] sm:$0xff] }
  0x18   :  { %111 = vmatpush.msra.mxu1 %v60_v22  ;;  %201 = vmatpush.msra.mxu2 %v143_v35  ;;  %v171_v48 = vld [vmem:[#allocation3 + $0x170] sm:$0xff]  ;;  %v45_v49 = vld [vmem:[%s689_s1] sm:$0xff]  ;;  %v152_v58 = vld [vmem:[#allocation3 + $0xd8] sm:$0xff] }
  0x19   :  { %92 = vmatpush.msra.mxu0 %v57_v25  ;;  %221 = vmatpush.msra.mxu3 %v175_v40  ;;  %v44_v51 = vld [vmem:[%s688_s0] sm:$0xff]  ;;  %v135_v54 = vld [vmem:[#allocation3 + $0x50] sm:$0xff]  ;;  %v184_v59 = vld [vmem:[#allocation3 + $0x1d8] sm:$0xff] }
  0x1a   :  { %112 = vmatpush.msra.mxu1 %v58_v26  ;;  %202 = vmatpush.msra.mxu2 %v141_v39  ;;  %v169_v55 = vld [vmem:[#allocation3 + $0x160] sm:$0xff]  ;;  %v150_v60 = vld [vmem:[#allocation3 + $0xc8] sm:$0xff]  ;;  %v148_v62 = vld [vmem:[#allocation3 + $0xb8] sm:$0xff] }
  0x1b   :  { %93 = vmatpush.msra.mxu0 %v55_v29  ;;  %222 = vmatpush.msra.mxu3 %v173_v44  ;;  %v182_v61 = vld [vmem:[#allocation3 + $0x1c8] sm:$0xff]  ;;  %v180_v63 = vld [vmem:[#allocation3 + $0x1b8] sm:$0xff]  ;;  %v133_v11 = vld [vmem:[#allocation3 + $0x40] sm:$0xff] }
  0x1c   :  { %113 = vmatpush.msra.mxu1 %v56_v30  ;;  %203 = vmatpush.msra.mxu2 %v139_v43  ;;  %v146_v0 = vld [vmem:[#allocation3 + $0xa8] sm:$0xff]  ;;  %v144_v2 = vld [vmem:[#allocation3 + $0x98] sm:$0xff]  ;;  %v167_v12 = vld [vmem:[#allocation3 + $0x150] sm:$0xff] }
  0x1d   :  { %94 = vmatpush.msra.mxu0 %v53_v33  ;;  %223 = vmatpush.msra.mxu3 %v171_v48  ;;  %v178_v1 = vld [vmem:[#allocation3 + $0x1a8] sm:$0xff]  ;;  %v176_v3 = vld [vmem:[#allocation3 + $0x198] sm:$0xff]  ;;  %v131_v15 = vld [vmem:[#allocation3 + $0x30] sm:$0xff] }
  0x1e   :  { %114 = vmatpush.msra.mxu1 %v54_v34  ;;  %204 = vmatpush.msra.mxu2 %v137_v47  ;;  %v142_v4 = vld [vmem:[#allocation3 + $0x88] sm:$0xff]  ;;  %v140_v6 = vld [vmem:[#allocation3 + $0x78] sm:$0xff]  ;;  %v165_v16 = vld [vmem:[#allocation3 + $0x140] sm:$0xff] }
  0x1f   :  { %95 = vmatpush.msra.mxu0 %v51_v37  ;;  %224 = vmatpush.msra.mxu3 %v169_v55  ;;  %v174_v5 = vld [vmem:[#allocation3 + $0x188] sm:$0xff]  ;;  %v172_v7 = vld [vmem:[#allocation3 + $0x178] sm:$0xff]  ;;  %v129_v19 = vld [vmem:[#allocation3 + $0x20] sm:$0xff] }
  0x20   :  { %115 = vmatpush.msra.mxu1 %v52_v38  ;;  %205 = vmatpush.msra.mxu2 %v135_v54  ;;  %v138_v8 = vld [vmem:[#allocation3 + $0x68] sm:$0xff]  ;;  %v136_v10 = vld [vmem:[#allocation3 + $0x58] sm:$0xff]  ;;  %v163_v20 = vld [vmem:[#allocation3 + $0x130] sm:$0xff] }
  0x21   :  { %96 = vmatpush.msra.mxu0 %v49_v41  ;;  %v170_v9 = vld [vmem:[#allocation3 + $0x168] sm:$0xff]  ;;  %225 = vmatpush.msra.mxu3 %v167_v12  ;;  %v168_v14 = vld [vmem:[#allocation3 + $0x158] sm:$0xff]  ;;  %v127_v23 = vld [vmem:[#allocation3 + $0x10] sm:$0xff] }
  0x22   :  { %116 = vmatpush.msra.mxu1 %v50_v42  ;;  %v134_v13 = vld [vmem:[#allocation3 + $0x48] sm:$0xff]  ;;  %206 = vmatpush.msra.mxu2 %v133_v11  ;;  %v132_v17 = vld [vmem:[#allocation3 + $0x38] sm:$0xff]  ;;  %v161_v24 = vld [vmem:[#allocation3 + $0x120] sm:$0xff] }
  0x23   :  { %97 = vmatpush.msra.mxu0 %v47_v45  ;;  %226 = vmatpush.msra.mxu3 %v165_v16  ;;  %v166_v18 = vld [vmem:[#allocation3 + $0x148] sm:$0xff]  ;;  %v164_v22 = vld [vmem:[#allocation3 + $0x138] sm:$0xff]  ;;  %v125_v27 = vld [vmem:[#allocation3] sm:$0xff] }
  0x24   :  { %117 = vmatpush.msra.mxu1 %v48_v46  ;;  %207 = vmatpush.msra.mxu2 %v131_v15  ;;  %v130_v21 = vld [vmem:[#allocation3 + $0x28] sm:$0xff]  ;;  %v128_v25 = vld [vmem:[#allocation3 + $0x18] sm:$0xff]  ;;  %v159_v28 = vld [vmem:[#allocation3 + $0x110] sm:$0xff] }
  0x25   :  { %98 = vmatpush.msra.mxu0 %v45_v49  ;;  %227 = vmatpush.msra.mxu3 %v163_v20  ;;  %v162_v26 = vld [vmem:[#allocation3 + $0x128] sm:$0xff]  ;;  %v160_v30 = vld [vmem:[#allocation3 + $0x118] sm:$0xff]  ;;  %v157_v31 = vld [vmem:[#allocation3 + $0x100] sm:$0xff] }
  0x26   :  { %118 = vmatpush.msra.mxu1 %v46_v50  ;;  %99 = vmatmul.f32.vlgmr.msra.gmra.mxu0 %v44_v51  ;;  %v126_v29 = vld [vmem:[#allocation3 + $0x8] sm:$0xff]  ;;  %v308_v33 = vld [vmem:[%s693_s5 + $0xf8] sm:$0xff]  ;;  %v307_v34 = vld [vmem:[%s693_s5 + $0xf0] sm:$0xff] }
  0x27   :  { %119 = vmatmul.f32.vlgmr.msra.gmra.mxu1 %v44_v51  ;;  %235 = vmatpush.msrb.mxu0 %v156_v52  ;;  %v158_v32 = vld [vmem:[#allocation3 + $0x108] sm:$0xff]  ;;  %v292_v35 = vld [vmem:[%s693_s5 + $0x78] sm:$0xff]  ;;  %v291_v36 = vld [vmem:[%s693_s5 + $0x70] sm:$0xff] }
  0x28   :  { %255 = vmatpush.msrb.mxu1 %v188_v53  ;;  %208 = vmatpush.msra.mxu2 %v129_v19  ;;  %v306_v37 = vld [vmem:[%s693_s5 + $0xe8] sm:$0xff]  ;;  %v305_v39 = vld [vmem:[%s693_s5 + $0xe0] sm:$0xff]  ;;  %v304_v41 = vld [vmem:[%s693_s5 + $0xd8] sm:$0xff] }
  0x29   :  { %236 = vmatpush.msrb.mxu0 %v154_v56  ;;  %228 = vmatpush.msra.mxu3 %v161_v24  ;;  %v290_v38 = vld [vmem:[%s693_s5 + $0x68] sm:$0xff]  ;;  %v289_v40 = vld [vmem:[%s693_s5 + $0x60] sm:$0xff]  ;;  %v288_v42 = vld [vmem:[%s693_s5 + $0x58] sm:$0xff] }
  0x2a   :  { %256 = vmatpush.msrb.mxu1 %v186_v57  ;;  %209 = vmatpush.msra.mxu2 %v127_v23  ;;  %v303_v43 = vld [vmem:[%s693_s5 + $0xd0] sm:$0xff]  ;;  %v302_v45 = vld [vmem:[%s693_s5 + $0xc8] sm:$0xff]  ;;  %v301_v47 = vld [vmem:[%s693_s5 + $0xc0] sm:$0xff]  ;;  %v310_v23 = vstv %s694_s6 }
  0x2b   :  { %237 = vmatpush.msrb.mxu0 %v152_v58  ;;  %229 = vmatpush.msra.mxu3 %v159_v28  ;;  %v287_v44 = vld [vmem:[%s693_s5 + $0x50] sm:$0xff]  ;;  %v286_v46 = vld [vmem:[%s693_s5 + $0x48] sm:$0xff]  ;;  %v300_v48 = vld [vmem:[%s693_s5 + $0xb8] sm:$0xff] }
  0x2c   :  { %257 = vmatpush.msrb.mxu1 %v184_v59  ;;  %210 = vmatpush.msra.mxu2 %v125_v27  ;;  %v77_v49 = vld [vmem:[%s690_s2] sm:$0x3]  ;;  %v299_v50 = vld [vmem:[%s693_s5 + $0xb0] sm:$0xff] }
  0x2d   :  { %238 = vmatpush.msrb.mxu0 %v150_v60  ;;  %230 = vmatpush.msra.mxu3 %v157_v31  ;;  %v79_v51 = vperm.slane %v77_v49, 0  ;;  %v80_v52 = vperm.slane %v77_v49, 1  ;;  %v285_v59 = vld [vmem:[%s693_s5 + $0x40] sm:$0xff]  ;;  %v298_v60 = vld [vmem:[%s693_s5 + $0xa8] sm:$0xff] }
  0x2e   :  { %258 = vmatpush.msrb.mxu1 %v182_v61  ;;  %311 = vmatpush.msrb.mxu2 %v292_v35  ;;  %v284_v61 = vld [vmem:[%s693_s5 + $0x38] sm:$0xff] }
  0x2f   :  { %239 = vmatpush.msrb.mxu0 %v148_v62  ;;  %331 = vmatpush.msrb.mxu3 %v308_v33  ;;  %v297_v62 = vld [vmem:[%s693_s5 + $0xa0] sm:$0xff] }
  0x30   :  { %259 = vmatpush.msrb.mxu1 %v180_v63  ;;  %312 = vmatpush.msrb.mxu2 %v291_v36  ;;  %v283_v63 = vld [vmem:[%s693_s5 + $0x30] sm:$0xff] }
  0x31   :  { %240 = vmatpush.msrb.mxu0 %v146_v0  ;;  %332 = vmatpush.msrb.mxu3 %v307_v34  ;;  %v296_v0 = vld [vmem:[%s693_s5 + $0x98] sm:$0xff] }
  0x32   :  { %260 = vmatpush.msrb.mxu1 %v178_v1  ;;  %313 = vmatpush.msrb.mxu2 %v290_v38  ;;  %v282_v1 = vld [vmem:[%s693_s5 + $0x28] sm:$0xff] }
  0x33   :  { %241 = vmatpush.msrb.mxu0 %v144_v2  ;;  %333 = vmatpush.msrb.mxu3 %v306_v37  ;;  %v295_v2 = vld [vmem:[%s693_s5 + $0x90] sm:$0xff] }
  0x34   :  { %261 = vmatpush.msrb.mxu1 %v176_v3  ;;  %314 = vmatpush.msrb.mxu2 %v289_v40  ;;  %v281_v3 = vld [vmem:[%s693_s5 + $0x20] sm:$0xff] }
  0x35   :  { %242 = vmatpush.msrb.mxu0 %v142_v4  ;;  %334 = vmatpush.msrb.mxu3 %v305_v39  ;;  %v294_v4 = vld [vmem:[%s693_s5 + $0x88] sm:$0xff] }
  0x36   :  { %262 = vmatpush.msrb.mxu1 %v174_v5  ;;  %315 = vmatpush.msrb.mxu2 %v288_v42  ;;  %v280_v5 = vld [vmem:[%s693_s5 + $0x18] sm:$0xff] }
  0x37   :  { %243 = vmatpush.msrb.mxu0 %v140_v6  ;;  %335 = vmatpush.msrb.mxu3 %v304_v41  ;;  %v293_v6 = vld [vmem:[%s693_s5 + $0x80] sm:$0xff] }
  0x38   :  { %263 = vmatpush.msrb.mxu1 %v172_v7  ;;  %316 = vmatpush.msrb.mxu2 %v287_v44  ;;  %v279_v7 = vld [vmem:[%s693_s5 + $0x10] sm:$0xff] }
  0x39   :  { %244 = vmatpush.msrb.mxu0 %v138_v8  ;;  %336 = vmatpush.msrb.mxu3 %v303_v43  ;;  %v278_v8 = vld [vmem:[%s693_s5 + $0x8] sm:$0xff] }
  0x3a   :  { %264 = vmatpush.msrb.mxu1 %v170_v9  ;;  %317 = vmatpush.msrb.mxu2 %v286_v46  ;;  %v277_v9 = vld [vmem:[%s693_s5] sm:$0xff] }
  0x3b   :  { %245 = vmatpush.msrb.mxu0 %v136_v10  ;;  %337 = vmatpush.msrb.mxu3 %v302_v45  ;;  %v189_v10 = vld [vmem:[%s692_s4] sm:$0x3]  ;;  %s437_s4 = smov [#allocation6]  }
  0x3c   :  { %265 = vmatpush.msrb.mxu1 %v168_v14  ;;  %318 = vmatpush.msrb.mxu2 %v285_v59  ;;  %v192_v11 = vperm.slane %v189_v10, 1  ;;  %v191_v16 = vperm.slane %v189_v10, 0  ;;  %s358_s14 = sshll.u32 %s437_s4, 4  ;;  %s359_s14 = int_to_ptr.vmem [resolvable:$true] %s358_s14 }
  0x3d   :  { %246 = vmatpush.msrb.mxu0 %v134_v13  ;;  %338 = vmatpush.msrb.mxu3 %v301_v47 }
  0x3e   :  { %266 = vmatpush.msrb.mxu1 %v166_v18  ;;  %319 = vmatpush.msrb.mxu2 %v284_v61 }
  0x3f   :  { %247 = vmatpush.msrb.mxu0 %v132_v17  ;;  %339 = vmatpush.msrb.mxu3 %v300_v48 }
  0x40   :  { %267 = vmatpush.msrb.mxu1 %v164_v22  ;;  %320 = vmatpush.msrb.mxu2 %v283_v63 }
  0x41   :  { %248 = vmatpush.msrb.mxu0 %v130_v21  ;;  %340 = vmatpush.msrb.mxu3 %v299_v50 }
  0x42   :  { %268 = vmatpush.msrb.mxu1 %v162_v26  ;;  %321 = vmatpush.msrb.mxu2 %v282_v1 }
  0x43   :  { %249 = vmatpush.msrb.mxu0 %v128_v25  ;;  %341 = vmatpush.msrb.mxu3 %v298_v60 }
  0x44   :  { %269 = vmatpush.msrb.mxu1 %v160_v30  ;;  %322 = vmatpush.msrb.mxu2 %v281_v3 }
  0x45   :  { %250 = vmatpush.msrb.mxu0 %v126_v29  ;;  %342 = vmatpush.msrb.mxu3 %v297_v62 }
  0x46   :  { %270 = vmatpush.msrb.mxu1 %v158_v32  ;;  %323 = vmatpush.msrb.mxu2 %v280_v5 }
  0x47   :  { %343 = vmatpush.msrb.mxu3 %v296_v0 }
  0x48   :  { %324 = vmatpush.msrb.mxu2 %v279_v7 }
  0x49   :  { %344 = vmatpush.msrb.mxu3 %v295_v2 }
  0x4a   :  { %325 = vmatpush.msrb.mxu2 %v278_v8 }
  0x4b   :  { %345 = vmatpush.msrb.mxu3 %v294_v4 }
  0x4c   :  { %326 = vmatpush.msrb.mxu2 %v277_v9 }
  0x4d   :  { %346 = vmatpush.msrb.mxu3 %v293_v6 }
  0xa3   :  { %v100_v53 = vpop.f32.mrf.mxu0 }
  0xa4   :  { %v120_v54 = vpop.f32.mrf.mxu1  ;;  %v101_v55 = vadd.f32 %v100_v53, %v79_v51 }
  0xa5   :  { %v121_v56 = vadd.f32 %v120_v54, %v80_v52 }
  0xa6   :  { %374 = vtanh.f32 %v101_v55 }
  0xa7   :  { %376 = vtanh.f32 %v121_v56 }
  0xac   :  { %v375_v57 = vpop.eup %374 }
  0xad   :  { %v377_v58 = vpop.eup %376  ;;  %211 = vmatmul.f32.vlgmr.msra.gmra.mxu2 %v375_v57  ;;  %251 = vmatmul.f32.vlgmr.msrb.gmra.mxu0 %v375_v57 }
  0xae   :  { %231 = vmatmul.f32.vlgmr.msra.gmra.mxu3 %v377_v58  ;;  %271 = vmatmul.f32.vlgmr.msrb.gmra.mxu1 %v377_v58 }
 0x12a   :  { %v252_v12 = vpop.f32.mrf.mxu0 }
 0x12b   :  { %v253_v13 = vadd.f32 %v252_v12, %v192_v11  ;;  %v272_v14 = vpop.f32.mrf.mxu1 }
 0x12d   :  { %v273_v15 = vadd.f32 %v272_v14, %v253_v13 }
 0x12f   :  { %378 = vtanh.f32 %v273_v15 }
 0x130   :  { %v212_v17 = vpop.f32.mrf.mxu2 }
 0x131   :  { %v213_v18 = vadd.f32 %v212_v17, %v191_v16  ;;  %v232_v19 = vpop.f32.mrf.mxu3 }
 0x133   :  { %v233_v20 = vadd.f32 %v232_v19, %v213_v18 }
 0x135   :  { %v379_v21 = vpop.eup %378  ;;  %380 = vtanh.f32 %v233_v20 }
 0x136   :  { %347 = vmatmul.f32.vlgmr.msrb.gmra.mxu3 %v379_v21 }
 0x13b   :  { %v381_v22 = vpop.eup %380 }
 0x13c   :  { %327 = vmatmul.f32.vlgmr.msrb.gmra.mxu2 %v381_v22 }
 0x1b9   :  { %v348_v26 = vpop.f32.mrf.mxu3 }
 0x1bf   :  { %v328_v24 = vpop.f32.mrf.mxu2 }
 0x1c0   :  { %v329_v25 = vadd.f32 %v328_v24, %v310_v23 }
 0x1c2   :  { %v349_v27 = vadd.f32 %v348_v26, %v329_v25 }
 0x1c4   :  { %352 = vst.msk [vmem:[#allocation6] sm:$0xff] %vm351_vm0, %v349_v27 }
 0x1c5   :  { %363 = dma.vmem_to_hbm [thread:$0]  %s359_s14, 128, %s361_s17, [#allocation5]  }
 0x1c6   :  { %432 = dma.done.wait [#allocation5], 128  }
 0x1c7   :  { %433 = vsyncadd [#allocation5], 4294967168 }
 0x1c8   :  { %368 = vsyncpa [#allocation4], 1 }
 0x1c9   :  { %369 = vsyncpa [#allocation5], 1 }

</bundles_post_ra>
